<compile_context>
chip_gen: v5e
topology: v5e:2x2
jax: 0.10.0
libtpu: 0.0.40
codegen_flags: <defaults>
</compile_context>

<pallas_src>
import functools

import jax
import jax.numpy as jnp
from jax.experimental import pallas as pl
from jax.experimental.pallas import tpu as pltpu


def _pool_project_kernel(x_ref, w_ref, shift_ref, y_ref, acc_ref, *, inv_hw):
    # x_ref:     (1, C_in, HW_CHUNK)  one spatial chunk of one image (NCHW-flat,
    #                                 spatial zero-padded to a multiple of 128)
    # w_ref:     (C_out, C_in)        1x1-conv weight with BN scale folded in (f32)
    # shift_ref: (C_out, 1)           folded BN shift = beta - mean * scale (f32)
    # y_ref:     (1, C_out, 1)        per-image pooled->conv->BN->ReLU vector (f32)
    # acc_ref:   (C_in, 128) f32      lane-partial running spatial sum
    s = pl.program_id(1)

    @pl.when(s == 0)
    def _():
        acc_ref[...] = jnp.zeros_like(acc_ref)

    # Streaming phase: VPU-only lane-partial adds (no per-chunk MXU or XLU reduce).
    # 128-aligned lane slices are free views; the unrolled adds co-issue with the
    # vld slots, keeping this loop HBM-bound.
    x = x_ref[0]                                          # (C_in, chunk)
    acc = acc_ref[...]
    for j in range(x.shape[-1] // 128):                   # static unroll (chunk is x128)
        acc = acc + x[:, j * 128:(j + 1) * 128].astype(jnp.float32)
    acc_ref[...] = acc

    @pl.when(s == pl.num_programs(1) - 1)
    def _():
        # One cross-lane reduce (XLU) + one tiny MXU matmul per image.
        pooled = jnp.sum(acc_ref[...], axis=-1, keepdims=True)            # (C_in, 1)
        z = jnp.dot(w_ref[...], pooled, preferred_element_type=jnp.float32)
        y_ref[0] = jnp.maximum(z * inv_hw + shift_ref[...], 0.0)          # (C_out, 1)


def _broadcast_kernel(y_ref, o_ref):
    # y_ref: (1, C_out, 1) f32;  o_ref: (1, C_out, HW_TILE) output tile.
    # Bilinear upsample from a 1x1 source == constant broadcast (either
    # align_corners setting).  Cast BEFORE the broadcast so all stores (and the
    # VMEM output buffer traffic) are in the narrow output dtype.
    y = y_ref[0].astype(o_ref.dtype)                                       # (C_out, 1)
    o_ref[0] = jnp.broadcast_to(y, o_ref.shape[1:])


def _vmem_capacity_bytes():
    try:
        return int(pltpu.get_tpu_info().vmem_capacity_bytes)
    except Exception:
        return 64 << 20   # conservative fallback (v7x physical VMEM per core)


_MAX_LANES = 16384  # cap a single lane chunk (bounds the statically-unrolled adds)


def _pick_chunk(total, rows, itemsize, target_bytes):
    """Largest multiple-of-128 chunk dividing `total` with rows*chunk*itemsize <~ target."""
    assert total % 128 == 0
    max_lanes = (target_bytes // max(1, rows * itemsize)) // 128 * 128
    max_lanes = max(128, min(max_lanes, _MAX_LANES))
    if total <= max_lanes:
        return total
    chunk = max_lanes
    while chunk >= 128:
        if total % chunk == 0:
            return chunk
        chunk -= 128
    return 128


def aspp_pooling(x, conv_w, gamma, beta, running_mean, running_var,
                 eps=1e-5, hw_chunk=None, hw_out_tile=None):
    """x: (N, C_in, H, W); conv_w: (C_out, C_in) or (C_out, C_in, 1, 1).
    Returns (N, C_out, H, W).  Eval-mode BatchNorm (running statistics)."""
    n, c_in, h, w = x.shape
    c_out = conv_w.shape[0]
    hw = h * w
    out_dtype = x.dtype
    itemsize = jnp.dtype(x.dtype).itemsize

    # Fold BatchNorm (eval / running stats) into the conv weight + per-channel shift.
    # TODO(synk): training-mode BN (batch statistics over N) would need a cross-batch
    # reduction; eval semantics are implemented here.
    w2d = conv_w.reshape(c_out, c_in).astype(jnp.float32)
    scale = gamma.astype(jnp.float32) / jnp.sqrt(running_var.astype(jnp.float32) + eps)
    w_scaled = w2d * scale[:, None]                                        # (C_out, C_in)
    shift = (beta.astype(jnp.float32)
             - running_mean.astype(jnp.float32) * scale).reshape(c_out, 1)

    # NCHW kept end-to-end; this reshape is free/contiguous.
    x_flat = x.reshape(n, c_in, hw)

    # Zero-pad the spatial axis to a multiple of 128 so every DMA chunk stays
    # 128-lane aligned (sum over zeros is exact; we divide by the true H*W).
    hw_pad = ((hw + 127) // 128) * 128
    if hw_pad != hw:
        x_flat = jnp.pad(x_flat, ((0, 0), (0, 0), (0, hw_pad - hw)))

    vmem_cap = _vmem_capacity_bytes()
    vmem_budget = int(0.75 * vmem_cap)          # leave headroom for compiler scratch
    target_block = vmem_cap // 16               # ~8 MiB on 128 MiB parts, ~4 MiB on v7x

    # ---- pass 1: chunked global-average-pool, then 1x1 conv + BN + ReLU at finalize
    if hw_chunk is None:
        hw_chunk = _pick_chunk(hw_pad, c_in, itemsize, target_block)
    assert hw_pad % hw_chunk == 0 and hw_chunk % 128 == 0
    n_chunks = hw_pad // hw_chunk

    p1_bytes = (2 * c_in * hw_chunk * itemsize          # input chunk (double-buffered)
                + 2 * (c_out * c_in + c_out) * 4        # folded weight + shift
                + 2 * c_out * 4                         # (1, C_out, 1) output block
                + c_in * 128 * 4)                       # accumulator scratch
    vmem1 = int(min(max(p1_bytes + (4 << 20), 32 << 20), vmem_budget))

    kernel1 = functools.partial(_pool_project_kernel, inv_hw=float(1.0 / hw))
    # TODO(synk): for N=1 on v7x, split the reduction chunks across the two
    # TensorCores (two partial accumulators combined at finalize) for full megacore use.
    y = pl.pallas_call(
        kernel1,
        out_shape=jax.ShapeDtypeStruct((n, c_out, 1), jnp.float32),
        grid=(n, n_chunks),
        in_specs=[
            pl.BlockSpec((1, c_in, hw_chunk), lambda b, s: (b, 0, s)),
            # Constant operands (index_map never changes across the grid).
            # TODO(synk): pipeline_mode=pl.Buffered(1) would drop their second VMEM
            # buffer where that option is available.
            pl.BlockSpec((c_out, c_in), lambda b, s: (0, 0)),
            pl.BlockSpec((c_out, 1), lambda b, s: (0, 0)),
        ],
        out_specs=pl.BlockSpec((1, c_out, 1), lambda b, s: (b, 0, 0)),
        scratch_shapes=[pltpu.VMEM((c_in, 128), jnp.float32)],
        compiler_params=pltpu.CompilerParams(
            dimension_semantics=("parallel", "arbitrary"),
            vmem_limit_bytes=vmem1),
    )(x_flat, w_scaled, shift)

    # ---- pass 2: broadcast the per-image constant back over (H, W), tiled writes ----
    if hw_out_tile is None:
        if hw % 128 == 0:
            hw_out_tile = _pick_chunk(hw, c_out, itemsize, target_block)
        else:
            # TODO(synk): masked tiled writes would avoid a full-plane output block
            # for non-128-multiple planes; full-plane-per-image is correct here.
            hw_out_tile = hw
    assert hw % hw_out_tile == 0
    n_out_tiles = hw // hw_out_tile

    p2_bytes = 2 * c_out * hw_out_tile * itemsize + 2 * c_out * 4
    vmem2 = int(min(max(p2_bytes + (4 << 20), 32 << 20), vmem_budget))

    out_flat = pl.pallas_call(
        _broadcast_kernel,
        out_shape=jax.ShapeDtypeStruct((n, c_out, hw), out_dtype),
        grid=(n, n_out_tiles),
        in_specs=[pl.BlockSpec((1, c_out, 1), lambda b, t: (b, 0, 0))],
        out_specs=pl.BlockSpec((1, c_out, hw_out_tile), lambda b, t: (b, 0, t)),
        compiler_params=pltpu.CompilerParams(
            # Both axes parallel: keeps v7x's second TensorCore busy even at N=1.
            dimension_semantics=("parallel", "parallel"),
            vmem_limit_bytes=vmem2),
    )(y)

    # Free reshape — already NCHW.
    return out_flat.reshape(n, c_out, h, w)


def _reference(x, conv_w, gamma, beta, running_mean, running_var, eps=1e-5):
    n, c_in, h, w = x.shape
    c_out = conv_w.shape[0]
    pooled = x.astype(jnp.float32).mean(axis=(2, 3))                      # (N, C_in)
    y = pooled @ conv_w.reshape(c_out, c_in).T                            # (N, C_out)
    scale = gamma / jnp.sqrt(running_var + eps)
    shift = beta - running_mean * scale
    y = jnp.maximum(y * scale + shift, 0.0)
    return jnp.broadcast_to(y[:, :, None, None], (n, c_out, h, w)).astype(x.dtype)


if __name__ == "__main__":
    key = jax.random.PRNGKey(0)
    k_x, k_w, k_g, k_b, k_m, k_v = jax.random.split(key, 6)

    N, C_IN, C_OUT, H, W = 2, 4, 8, 16, 16

    x = jax.random.normal(k_x, (N, C_IN, H, W), dtype=jnp.float32)
    conv_w = jax.random.normal(k_w, (C_OUT, C_IN), dtype=jnp.float32) * 0.1
    gamma = 1.0 + 0.1 * jax.random.normal(k_g, (C_OUT,), dtype=jnp.float32)
    beta = 0.05 * jax.random.normal(k_b, (C_OUT,), dtype=jnp.float32)
    running_mean = 0.01 * jax.random.normal(k_m, (C_OUT,), dtype=jnp.float32)
    running_var = 1.0 + 0.1 * jax.nn.softplus(
        jax.random.normal(k_v, (C_OUT,), dtype=jnp.float32))

    # hw_chunk=128 forces the chunked-reduction (accumulator) path (2 chunks/image);
    # hw_out_tile=128 forces the tiled-broadcast path (2 output tiles/image).
    out = aspp_pooling(x, conv_w, gamma, beta, running_mean, running_var,
                       hw_chunk=128, hw_out_tile=128)
    out = jax.block_until_ready(out)

    ref = _reference(x, conv_w, gamma, beta, running_mean, running_var)
    assert out.shape == (N, C_OUT, H, W)
    assert jnp.allclose(out, ref, atol=1e-5, rtol=1e-5)

    print("KERNEL_OK")
</pallas_src>

<mosaic_0001>
module attributes {stable_mosaic.version = 11 : i64} {
  func.func @_pool_project_kernel(%arg0: i32, %arg1: i32, %arg2: memref<1x4x128xf32, #tpu.memory_space<vmem>>, %arg3: memref<8x4xf32, #tpu.memory_space<vmem>>, %arg4: memref<8x1xf32, #tpu.memory_space<vmem>>, %arg5: memref<1x8x1xf32, #tpu.memory_space<vmem>>, %arg6: memref<4x128xf32, #tpu.memory_space<vmem>>) attributes {dimension_semantics = [#tpu.dimension_semantics<parallel>, #tpu.dimension_semantics<arbitrary>], iteration_bounds = array<i64: 2, 2>, scalar_prefetch = 0 : i64, scratch_operands = 1 : i64, tpu.core_type = #tpu.core_type<tc>, window_params = [{transform_indices = @transform_0, window_bounds = array<i64: 1, 4, 128>}, {pipeline_mode = #tpu.pipeline_mode<synchronous>, transform_indices = @transform_1, window_bounds = array<i64: 8, 4>}, {pipeline_mode = #tpu.pipeline_mode<synchronous>, transform_indices = @transform_2, window_bounds = array<i64: 8, 1>}, {transform_indices = @transform_3, window_bounds = array<i64: 1, 8, 1>}]} {
    %c0_i32 = arith.constant 0 : i32
    %0 = arith.cmpi eq, %arg1, %c0_i32 : i32
    %1 = arith.extui %0 : i1 to i32
    %c0_i32_0 = arith.constant 0 : i32
    %2 = arith.cmpi ne, %1, %c0_i32_0 : i32
    scf.if %2 {
      %cst = arith.constant 0.000000e+00 : f32
      %11 = vector.broadcast %cst : f32 to vector<4x128xf32>
      %c0_8 = arith.constant 0 : index
      %c0_9 = arith.constant 0 : index
      %12 = vector.load %arg6[%c0_8, %c0_9] : memref<4x128xf32, #tpu.memory_space<vmem>>, vector<4x128xf32>
      tpu.vector_store %arg6[%c0_8, %c0_9], %11 {strides = array<i32>} : memref<4x128xf32, #tpu.memory_space<vmem>>, vector<4x128xf32>,
    } else {
    }
    %c0 = arith.constant 0 : index
    %c0_1 = arith.constant 0 : index
    %c0_2 = arith.constant 0 : index
    %3 = vector.load %arg2[%c0, %c0_1, %c0_2] : memref<1x4x128xf32, #tpu.memory_space<vmem>>, vector<1x4x128xf32>
    %4 = vector.shape_cast %3 : vector<1x4x128xf32> to vector<4x128xf32>
    %c0_3 = arith.constant 0 : index
    %c0_4 = arith.constant 0 : index
    %5 = vector.load %arg6[%c0_3, %c0_4] : memref<4x128xf32, #tpu.memory_space<vmem>>, vector<4x128xf32>
    %6 = arith.addf %5, %4 : vector<4x128xf32>
    %c0_5 = arith.constant 0 : index
    %c0_6 = arith.constant 0 : index
    %7 = vector.load %arg6[%c0_5, %c0_6] : memref<4x128xf32, #tpu.memory_space<vmem>>, vector<4x128xf32>
    tpu.vector_store %arg6[%c0_5, %c0_6], %6 {strides = array<i32>} : memref<4x128xf32, #tpu.memory_space<vmem>>, vector<4x128xf32>,
    %c1_i32 = arith.constant 1 : i32
    %8 = arith.cmpi eq, %arg1, %c1_i32 : i32
    %9 = arith.extui %8 : i1 to i32
    %c0_i32_7 = arith.constant 0 : i32
    %10 = arith.cmpi ne, %9, %c0_i32_7 : i32
    scf.if %10 {
      %c0_8 = arith.constant 0 : index
      %c0_9 = arith.constant 0 : index
      %11 = vector.load %arg6[%c0_8, %c0_9] : memref<4x128xf32, #tpu.memory_space<vmem>>, vector<4x128xf32>
      %cst = arith.constant dense<0.000000e+00> : vector<4xf32>
      %12 = vector.multi_reduction <add>, %11, %cst [1] : vector<4x128xf32> to vector<4xf32>
      %13 = vector.shape_cast %12 : vector<4xf32> to vector<4x1xf32>
      %c0_10 = arith.constant 0 : index
      %c0_11 = arith.constant 0 : index
      %14 = vector.load %arg3[%c0_10, %c0_11] : memref<8x4xf32, #tpu.memory_space<vmem>>, vector<8x4xf32>
      %cst_12 = arith.constant dense<0.000000e+00> : vector<8x1xf32>
      %15 = tpu.matmul %14, %13, %cst_12 {dimension_numbers = #tpu.dot_dimension_numbers<[1], [0], [0], [1], [0, 0, 1, 1], [], []>} : vector<8x4xf32>, vector<4x1xf32>, vector<8x1xf32> -> vector<8x1xf32>
      %cst_13 = arith.constant 3.906250e-03 : f32
      %16 = vector.broadcast %cst_13 : f32 to vector<8x1xf32>
      %17 = arith.mulf %15, %16 : vector<8x1xf32>
      %c0_14 = arith.constant 0 : index
      %c0_15 = arith.constant 0 : index
      %18 = vector.load %arg4[%c0_14, %c0_15] : memref<8x1xf32, #tpu.memory_space<vmem>>, vector<8x1xf32>
      %19 = arith.addf %17, %18 : vector<8x1xf32>
      %cst_16 = arith.constant 0.000000e+00 : f32
      %20 = vector.broadcast %cst_16 : f32 to vector<8x1xf32>
      %21 = arith.maximumf %19, %20 : vector<8x1xf32>
      %c0_17 = arith.constant 0 : index
      %c0_18 = arith.constant 0 : index
      %c0_19 = arith.constant 0 : index
      %22 = vector.load %arg5[%c0_17, %c0_18, %c0_19] : memref<1x8x1xf32, #tpu.memory_space<vmem>>, vector<1x8x1xf32>
      %23 = vector.shape_cast %22 : vector<1x8x1xf32> to vector<8x1xf32>
      %24 = vector.shape_cast %21 : vector<8x1xf32> to vector<1x8x1xf32>
      tpu.vector_store %arg5[%c0_17, %c0_18, %c0_19], %24 {strides = array<i32>} : memref<1x8x1xf32, #tpu.memory_space<vmem>>, vector<1x8x1xf32>,
    } else {
    }
    return
  }
  func.func @transform_0(%arg0: i32, %arg1: i32) -> (i32, i32, i32) {
    %c0_i32 = arith.constant 0 : i32
    %c0_i32_0 = arith.constant 0 : i32
    return %arg0, %c0_i32, %arg1 : i32, i32, i32
  }
  func.func @transform_1(%arg0: i32, %arg1: i32) -> (i32, i32) {
    %c0_i32 = arith.constant 0 : i32
    %c0_i32_0 = arith.constant 0 : i32
    %c0_i32_1 = arith.constant 0 : i32
    return %c0_i32, %c0_i32_0 : i32, i32
  }
  func.func @transform_2(%arg0: i32, %arg1: i32) -> (i32, i32) {
    %c0_i32 = arith.constant 0 : i32
    %c0_i32_0 = arith.constant 0 : i32
    %c0_i32_1 = arith.constant 0 : i32
    return %c0_i32, %c0_i32_0 : i32, i32
  }
  func.func @transform_3(%arg0: i32, %arg1: i32) -> (i32, i32, i32) {
    %c0_i32 = arith.constant 0 : i32
    %c0_i32_0 = arith.constant 0 : i32
    %c0_i32_1 = arith.constant 0 : i32
    return %arg0, %c0_i32, %c0_i32_0 : i32, i32, i32
  }
}

</mosaic_0001>

<bundles_post_ra>
// kernel: tpu_custom_call.1
= control target key start
LH: loop header
LB: loop body
LE: loop exit
PB: predicated region body
PF: predicated region fallthrough
CT: control target
= control target key end

     0   :  { %s430_s12 = smov 0   ;;  %s432_s13 = smov 0   ;;  %s493_s0 = inlined_call_operand.vmem [shape: f32[2,4,256], index: 0, kind: input, shape index: {}]   ;;  %s494_s1 = inlined_call_operand.vmem [shape: f32[8,4], index: 1, kind: input, shape index: {}]   ;;  %s495_s2 = inlined_call_operand.vmem [shape: f32[8,1], index: 2, kind: input, shape index: {}]   ;;  %s496_s3 = inlined_call_operand.vmem [shape: f32[2,8,1], index: 3, kind: output, shape index: {}]  }
   0x1   :  { %s434_s14 = smov 0   ;;  %s436_s15 = smov 0  }
   0x2   :  { %s438_s16 = smov 0  }
   0x3 LB: > { %s22_s17 = sadd.s32 1, %s399_s14  ;;  %s25_s18 = sadd.s32 1, %s403_s15  ;;  %s407_s16 = sphi %s438_s16, %s13_s16   ;;  %s403_s15 = sphi %s436_s15, %s500_s15   ;;  %s399_s14 = sphi %s434_s14, %s499_s14   ;;  %s395_s13 = sphi %s432_s13, %s498_s13   ;;  %s391_s12 = sphi %s430_s12, %s497_s12  }
   0x4   : > { %p23_p0 = scmp.ge.s32.totalorder %s22_s17, 2  ;;  %p318_p1 = scmp.ge.s32.totalorder %s407_s16, 1 }
   0x5   : > { %p154_p2 = scmp.lt.s32.totalorder %s407_s16, 5 }
   0x6   : > { %s502_s17 = smov (%p23_p0, %s22_s17), 0  ;;  %s504_s18 = smov (!%p23_p0, %s25_s18), %s403_s15 }
   0x7   : > { %p155_p3 = pnand %p318_p1, %p154_p2  ;;  %p27_p4 = scmp.ge.s32.totalorder %s504_s18, 2 }
   0x8   : > { %p180_p5 = scmp.lt.s32.totalorder (!%p155_p3), %s395_s13, 1  ;;  %p182_p6 = scmp.lt.s32.totalorder (!%p155_p3), %s391_s12, 1 }
   0x9   : > { %s506_s18 = smov (%p27_p4, %s504_s18), 0  ;;  %158 = sbr.rel (%p155_p3) target bundleno = 293 (0x125), region = 32 }
   0xa   : > { %p322_p7 = scmp.ne.s32.totalorder (!%p155_p3), %s391_s12, 0 }
   0xe   : > { %s508_s13 = smov (!%p180_p5, %s395_s13), 1 }
   0xf   : > { %s183_s19 = scalar_select %p182_p6, %s391_s12, 1 }
  0x10   : > { %s319_s20 = sshll.u32 %s508_s13, 1  ;;  %s321_s21 = sshll.u32 %s508_s13, 3 }
  0x11   : > { %s185_s22 = sadd.s32 %s319_s20, %s183_s19  ;;  %s191_s25 = scalar_lea.vmem %s496_s3, %s321_s21 }
  0x12   : > { %s320_s26 = sshll.u32 %s185_s22, 2  ;;  %195 = sbr.rel (%p322_p7) target bundleno = 25 (0x19), region = 36 }
  0x13   : > { %s187_s29 = scalar_lea.vmem %s493_s0, %s320_s26 }
  0x17   : > { %v409_v0 = vmov 0.0  }
  0x18   : > { %196 = vst [vmem:[#allocation2] sm:$0xf] %v409_v0 }
  0x19 PF: > { %v197_v1 = vld [vmem:[%s187_s29] sm:$0xf]  ;;  %p323_p8 = scmp.ne.s32.totalorder %s391_s12, 1 }
  0x1e   : > { %204 = sbr.rel (%p323_p8) target bundleno = 293 (0x125), region = 40 }
  0x1f   : > { %v198_v2 = vld [vmem:[#allocation2] sm:$0xf] }
  0x20   : > { %v199_v3 = vadd.f32 %v198_v2, %v197_v1 }
  0x22   : > { %200 = vst [vmem:[#allocation2] sm:$0xf] %v199_v3 }
  0x23   : > { %vm206_vm0 = vcmask 1043456   ;;  %v210_v6 = vld [vmem:[%s494_s1] sm:$0xff]  ;;  %vm211_vm1 = vcmask 31744   ;;  %vm242_vm2 = vcmask 7168  }
  0x24   : > { %v239_v9 = vld [vmem:[%s495_s2] sm:$0xff] }
  0x29   : > { %v205_v4 = vld [vmem:[#allocation2] sm:$0xf] }
  0x2a   : > { %v207_v5 = vsel %vm206_vm0, %v205_v4, 0.0 }
  0x2b   : > { %208 = vadd.xlane.f32.xlu0 %v207_v5 }
  0x9e   : > { %v209_v7 = vpop.xlane.xlu0 %208 }
  0x9f   : > { %324 = vmatpush.msk.msra.mxu0 %vm206_vm0, %v209_v7 }
  0xa0   : > { %325 = vmatmul.msk.f32.vlgmr.msra.gmra.mxu0 %vm211_vm1, %v210_v6 }
 0x11d   : > { %v235_v8 = vpop.f32.mrf.mxu0 }
 0x11e   : > { %v238_v10 = vmul.f32 0.00390625, %v235_v8 }
 0x120   : > { %v240_v11 = vadd.f32 %v239_v9, %v238_v10 }
 0x122   : > { %v241_v12 = vmax.f32 %v240_v11, 0.0 }
 0x124   : > { %243 = vst.msk [vmem:[%s191_s25] sm:$0xff] %vm242_vm2, %v241_v12 }
 0x125 PF: > { %s13_s16 = sadd.s32 1, %s407_s16   ;;  %s497_s12 = smov %s399_s14 }
 0x126   : > { %p10_p9 = scmp.ge.s32.totalorder %s13_s16, 6   ;;  %s498_s13 = smov %s403_s15 }
 0x127   : > { %s499_s14 = smov %s502_s17  ;;  %s500_s15 = smov %s506_s18 }
 0x128   :  { %12 = sbr.rel (!%p10_p9) target bundleno = 3 (0x3), region = 70 }

</bundles_post_ra>
